<compile_context>
chip_gen: v6e
topology: v6e:2x2x1
jax: 0.10.0
libtpu: 0.0.40
codegen_flags: <defaults>
</compile_context>

<pallas_src>
import jax
import jax.numpy as jnp
from jax.experimental import pallas as pl
from jax.experimental.pallas import tpu as pltpu

IN_F = 2    # fc1 in_features
HID = 5     # fc1 out_features / fc2 in_features
OUT_F = 1   # fc2 out_features

_LANE = 128   # vreg lane width (fast axis)
_SUB = 8      # vreg sublane count for f32
# Max 128-wide rows per batch tile: 4096 rows -> x tile [2,4096,128] f32 = 4 MiB,
# out tile [4096,128] f32 = 2 MiB; ~12 MiB with double buffering.
_ROWS_TILE_MAX = 4096


def mlp_kernel(w1_ref, b1_ref, w2_ref, b2_ref, x_ref, o_ref):
    """Fused MLP on one batch tile.

    x_ref: [IN_F, ROWS_TILE, 128] (VMEM), o_ref: [ROWS_TILE, 128] (VMEM).
    w1_ref [2,5], b1_ref [5], w2_ref [5], b2_ref [1] are SMEM-resident scalars.
    """
    x0 = x_ref[0]                         # [ROWS_TILE, 128]
    x1 = x_ref[1]                         # [ROWS_TILE, 128]

    # Fold fc2 bias into the accumulator init (saves one VALU add per element).
    acc = jnp.full_like(x0, b2_ref[0])
    for j in range(HID):                  # fully unrolled: 5 hidden units
        h = w1_ref[0, j] * x0 + w1_ref[1, j] * x1 + b1_ref[j]
        h = jnp.maximum(h, 0.0)           # ReLU
        acc = acc + w2_ref[j] * h

    # sigmoid(y) = 1 / (1 + exp(-y)); exp and the approx reciprocal both use the
    # EUP slot, keeping the VALU free.
    o_ref[...] = pl.reciprocal(1.0 + jnp.exp(-acc), approx=True)


def my_mlp_forward(x, w1, b1, w2, b2, *, rows_tile_max=_ROWS_TILE_MAX):
    """x: [B, 2] f32. w1: [2,5], b1: [5], w2: [5], b2: [1]. Returns [B, 1] f32."""
    B = x.shape[0]
    assert x.shape == (B, IN_F)
    assert w1.shape == (IN_F, HID) and b1.shape == (HID,)
    assert w2.shape == (HID,) and b2.shape == (OUT_F,)

    # --- tile / pad selection (sublane-dense batch layout) ---
    rows_needed = pl.cdiv(B, _LANE)
    n_tiles = pl.cdiv(rows_needed, rows_tile_max)
    if n_tiles == 1 and rows_needed >= 2 * _SUB:
        n_tiles = 2                              # >=2 grid steps for v7x's 2 TCs
    rows_tile = pl.cdiv(rows_needed, n_tiles)
    rows_tile = pl.cdiv(rows_tile, _SUB) * _SUB  # multiple of 8 sublanes
    rows = n_tiles * rows_tile
    b_pad = rows * _LANE                         # padding <= ~n_tiles*1024 elems

    # Layout plumbing: one materialization (pad fuses into transpose), then a
    # free row-major reshape:  [B,2] -> [b_pad,2] -> [2,b_pad] -> [2,rows,128].
    x_pad = jnp.pad(x, ((0, b_pad - B), (0, 0)))
    xt = x_pad.T.reshape(IN_F, rows, _LANE)

    smem = pl.BlockSpec(memory_space=pltpu.MemorySpace.SMEM)  # whole array in SMEM

    out = pl.pallas_call(
        mlp_kernel,
        out_shape=jax.ShapeDtypeStruct((rows, _LANE), jnp.float32),
        grid_spec=pltpu.PrefetchScalarGridSpec(
            num_scalar_prefetch=0,
            grid=(n_tiles,),
            in_specs=[
                smem,                                                    # w1 [2,5]
                smem,                                                    # b1 [5]
                smem,                                                    # w2 [5]
                smem,                                                    # b2 [1]
                pl.BlockSpec((IN_F, rows_tile, _LANE), lambda i: (0, i, 0)),
            ],
            out_specs=pl.BlockSpec((rows_tile, _LANE), lambda i: (i, 0)),
        ),
        compiler_params=pltpu.CompilerParams(
            dimension_semantics=("parallel",),     # shard batch tiles across TCs
            vmem_limit_bytes=32 * 1024 * 1024,     # ~12 MiB used; v7x-safe
        ),
        cost_estimate=pl.CostEstimate(
            flops=37 * b_pad,                      # ~37 VPU ops / element
            transcendentals=2 * b_pad,             # exp + reciprocal
            bytes_accessed=(IN_F + OUT_F) * 4 * b_pad,
        ),
    )(w1, b1, w2, b2, xt)

    # [rows,128] -> [b_pad] (free) -> [B,1]
    return out.reshape(b_pad)[:B].reshape(B, OUT_F)


def init_params(key):
    # Deterministic init mimicking nn.Linear (uniform in +-1/sqrt(fan_in)).
    k1, k2, k3, k4 = jax.random.split(key, 4)
    lim1 = 1.0 / jnp.sqrt(2.0)
    lim2 = 1.0 / jnp.sqrt(5.0)
    # fc1 weight stored transposed: [in_features, out_features].
    w1 = jax.random.uniform(k1, (IN_F, HID), jnp.float32, -lim1, lim1)
    b1 = jax.random.uniform(k2, (HID,), jnp.float32, -lim1, lim1)
    # fc2 weight flattened (out_features == 1): [in_features].
    w2 = jax.random.uniform(k3, (HID,), jnp.float32, -lim2, lim2)
    b2 = jax.random.uniform(k4, (OUT_F,), jnp.float32, -lim2, lim2)
    return w1, b1, w2, b2


if __name__ == "__main__":
    key = jax.random.PRNGKey(0)
    kx, kp = jax.random.split(key)
    B = 8
    x = jax.random.normal(kx, (B, IN_F), jnp.float32)   # batch=8, in_features=2
    w1, b1, w2, b2 = init_params(kp)

    out = my_mlp_forward(x, w1, b1, w2, b2)
    out = jax.block_until_ready(out)

    # Pure-JAX reference of the same math.
    ref = jax.nn.sigmoid(
        jnp.maximum(x @ w1 + b1[None, :], 0.0) @ w2[:, None] + b2[None, :]
    )
    assert out.shape == (B, OUT_F)
    # approx-reciprocal sigmoid => slightly looser tolerance than exact f32.
    assert jnp.allclose(out, ref, atol=2e-3), "mismatch vs reference"

    print("KERNEL_OK")
</pallas_src>

<mosaic_0001>
module attributes {stable_mosaic.version = 11 : i64} {
  func.func @mlp_kernel(%arg0: i32, %arg1: memref<2x5xf32, #tpu.memory_space<smem>>, %arg2: memref<5xf32, #tpu.memory_space<smem>>, %arg3: memref<5xf32, #tpu.memory_space<smem>>, %arg4: memref<1xf32, #tpu.memory_space<smem>>, %arg5: memref<2x8x128xf32, #tpu.memory_space<vmem>>, %arg6: memref<8x128xf32, #tpu.memory_space<vmem>>) attributes {dimension_semantics = [#tpu.dimension_semantics<parallel>], iteration_bounds = array<i64: 1>, scalar_prefetch = 0 : i64, scratch_operands = 0 : i64, tpu.core_type = #tpu.core_type<tc>, window_params = [{transform_indices = @transform_0, window_bounds = array<i64: 2, 5>}, {transform_indices = @transform_1, window_bounds = array<i64: 5>}, {transform_indices = @transform_2, window_bounds = array<i64: 5>}, {transform_indices = @transform_3, window_bounds = array<i64: 1>}, {transform_indices = @transform_4, window_bounds = array<i64: 2, 8, 128>}, {transform_indices = @transform_5, window_bounds = array<i64: 8, 128>}]} {
    %c0 = arith.constant 0 : index
    %c0_0 = arith.constant 0 : index
    %c0_1 = arith.constant 0 : index
    %0 = vector.load %arg5[%c0, %c0_0, %c0_1] : memref<2x8x128xf32, #tpu.memory_space<vmem>>, vector<1x8x128xf32>
    %1 = vector.shape_cast %0 : vector<1x8x128xf32> to vector<8x128xf32>
    %c1 = arith.constant 1 : index
    %c0_2 = arith.constant 0 : index
    %c0_3 = arith.constant 0 : index
    %2 = vector.load %arg5[%c1, %c0_2, %c0_3] : memref<2x8x128xf32, #tpu.memory_space<vmem>>, vector<1x8x128xf32>
    %3 = vector.shape_cast %2 : vector<1x8x128xf32> to vector<8x128xf32>
    %c0_4 = arith.constant 0 : index
    %4 = memref.load %arg4[%c0_4] : memref<1xf32, #tpu.memory_space<smem>>
    %5 = vector.broadcast %4 : f32 to vector<8x128xf32>
    %c0_5 = arith.constant 0 : index
    %c0_6 = arith.constant 0 : index
    %6 = memref.load %arg1[%c0_5, %c0_6] : memref<2x5xf32, #tpu.memory_space<smem>>
    %7 = vector.broadcast %6 : f32 to vector<8x128xf32>
    %8 = arith.mulf %7, %1 : vector<8x128xf32>
    %c1_7 = arith.constant 1 : index
    %c0_8 = arith.constant 0 : index
    %9 = memref.load %arg1[%c1_7, %c0_8] : memref<2x5xf32, #tpu.memory_space<smem>>
    %10 = vector.broadcast %9 : f32 to vector<8x128xf32>
    %11 = arith.mulf %10, %3 : vector<8x128xf32>
    %12 = arith.addf %8, %11 : vector<8x128xf32>
    %c0_9 = arith.constant 0 : index
    %13 = memref.load %arg2[%c0_9] : memref<5xf32, #tpu.memory_space<smem>>
    %14 = vector.broadcast %13 : f32 to vector<8x128xf32>
    %15 = arith.addf %12, %14 : vector<8x128xf32>
    %cst = arith.constant 0.000000e+00 : f32
    %16 = vector.broadcast %cst : f32 to vector<8x128xf32>
    %17 = arith.maximumf %15, %16 : vector<8x128xf32>
    %c0_10 = arith.constant 0 : index
    %18 = memref.load %arg3[%c0_10] : memref<5xf32, #tpu.memory_space<smem>>
    %19 = vector.broadcast %18 : f32 to vector<8x128xf32>
    %20 = arith.mulf %19, %17 : vector<8x128xf32>
    %21 = arith.addf %5, %20 : vector<8x128xf32>
    %c0_11 = arith.constant 0 : index
    %c1_12 = arith.constant 1 : index
    %22 = memref.load %arg1[%c0_11, %c1_12] : memref<2x5xf32, #tpu.memory_space<smem>>
    %23 = vector.broadcast %22 : f32 to vector<8x128xf32>
    %24 = arith.mulf %23, %1 : vector<8x128xf32>
    %c1_13 = arith.constant 1 : index
    %c1_14 = arith.constant 1 : index
    %25 = memref.load %arg1[%c1_13, %c1_14] : memref<2x5xf32, #tpu.memory_space<smem>>
    %26 = vector.broadcast %25 : f32 to vector<8x128xf32>
    %27 = arith.mulf %26, %3 : vector<8x128xf32>
    %28 = arith.addf %24, %27 : vector<8x128xf32>
    %c1_15 = arith.constant 1 : index
    %29 = memref.load %arg2[%c1_15] : memref<5xf32, #tpu.memory_space<smem>>
    %30 = vector.broadcast %29 : f32 to vector<8x128xf32>
    %31 = arith.addf %28, %30 : vector<8x128xf32>
    %cst_16 = arith.constant 0.000000e+00 : f32
    %32 = vector.broadcast %cst_16 : f32 to vector<8x128xf32>
    %33 = arith.maximumf %31, %32 : vector<8x128xf32>
    %c1_17 = arith.constant 1 : index
    %34 = memref.load %arg3[%c1_17] : memref<5xf32, #tpu.memory_space<smem>>
    %35 = vector.broadcast %34 : f32 to vector<8x128xf32>
    %36 = arith.mulf %35, %33 : vector<8x128xf32>
    %37 = arith.addf %21, %36 : vector<8x128xf32>
    %c0_18 = arith.constant 0 : index
    %c2 = arith.constant 2 : index
    %38 = memref.load %arg1[%c0_18, %c2] : memref<2x5xf32, #tpu.memory_space<smem>>
    %39 = vector.broadcast %38 : f32 to vector<8x128xf32>
    %40 = arith.mulf %39, %1 : vector<8x128xf32>
    %c1_19 = arith.constant 1 : index
    %c2_20 = arith.constant 2 : index
    %41 = memref.load %arg1[%c1_19, %c2_20] : memref<2x5xf32, #tpu.memory_space<smem>>
    %42 = vector.broadcast %41 : f32 to vector<8x128xf32>
    %43 = arith.mulf %42, %3 : vector<8x128xf32>
    %44 = arith.addf %40, %43 : vector<8x128xf32>
    %c2_21 = arith.constant 2 : index
    %45 = memref.load %arg2[%c2_21] : memref<5xf32, #tpu.memory_space<smem>>
    %46 = vector.broadcast %45 : f32 to vector<8x128xf32>
    %47 = arith.addf %44, %46 : vector<8x128xf32>
    %cst_22 = arith.constant 0.000000e+00 : f32
    %48 = vector.broadcast %cst_22 : f32 to vector<8x128xf32>
    %49 = arith.maximumf %47, %48 : vector<8x128xf32>
    %c2_23 = arith.constant 2 : index
    %50 = memref.load %arg3[%c2_23] : memref<5xf32, #tpu.memory_space<smem>>
    %51 = vector.broadcast %50 : f32 to vector<8x128xf32>
    %52 = arith.mulf %51, %49 : vector<8x128xf32>
    %53 = arith.addf %37, %52 : vector<8x128xf32>
    %c0_24 = arith.constant 0 : index
    %c3 = arith.constant 3 : index
    %54 = memref.load %arg1[%c0_24, %c3] : memref<2x5xf32, #tpu.memory_space<smem>>
    %55 = vector.broadcast %54 : f32 to vector<8x128xf32>
    %56 = arith.mulf %55, %1 : vector<8x128xf32>
    %c1_25 = arith.constant 1 : index
    %c3_26 = arith.constant 3 : index
    %57 = memref.load %arg1[%c1_25, %c3_26] : memref<2x5xf32, #tpu.memory_space<smem>>
    %58 = vector.broadcast %57 : f32 to vector<8x128xf32>
    %59 = arith.mulf %58, %3 : vector<8x128xf32>
    %60 = arith.addf %56, %59 : vector<8x128xf32>
    %c3_27 = arith.constant 3 : index
    %61 = memref.load %arg2[%c3_27] : memref<5xf32, #tpu.memory_space<smem>>
    %62 = vector.broadcast %61 : f32 to vector<8x128xf32>
    %63 = arith.addf %60, %62 : vector<8x128xf32>
    %cst_28 = arith.constant 0.000000e+00 : f32
    %64 = vector.broadcast %cst_28 : f32 to vector<8x128xf32>
    %65 = arith.maximumf %63, %64 : vector<8x128xf32>
    %c3_29 = arith.constant 3 : index
    %66 = memref.load %arg3[%c3_29] : memref<5xf32, #tpu.memory_space<smem>>
    %67 = vector.broadcast %66 : f32 to vector<8x128xf32>
    %68 = arith.mulf %67, %65 : vector<8x128xf32>
    %69 = arith.addf %53, %68 : vector<8x128xf32>
    %c0_30 = arith.constant 0 : index
    %c4 = arith.constant 4 : index
    %70 = memref.load %arg1[%c0_30, %c4] : memref<2x5xf32, #tpu.memory_space<smem>>
    %71 = vector.broadcast %70 : f32 to vector<8x128xf32>
    %72 = arith.mulf %71, %1 : vector<8x128xf32>
    %c1_31 = arith.constant 1 : index
    %c4_32 = arith.constant 4 : index
    %73 = memref.load %arg1[%c1_31, %c4_32] : memref<2x5xf32, #tpu.memory_space<smem>>
    %74 = vector.broadcast %73 : f32 to vector<8x128xf32>
    %75 = arith.mulf %74, %3 : vector<8x128xf32>
    %76 = arith.addf %72, %75 : vector<8x128xf32>
    %c4_33 = arith.constant 4 : index
    %77 = memref.load %arg2[%c4_33] : memref<5xf32, #tpu.memory_space<smem>>
    %78 = vector.broadcast %77 : f32 to vector<8x128xf32>
    %79 = arith.addf %76, %78 : vector<8x128xf32>
    %cst_34 = arith.constant 0.000000e+00 : f32
    %80 = vector.broadcast %cst_34 : f32 to vector<8x128xf32>
    %81 = arith.maximumf %79, %80 : vector<8x128xf32>
    %c4_35 = arith.constant 4 : index
    %82 = memref.load %arg3[%c4_35] : memref<5xf32, #tpu.memory_space<smem>>
    %83 = vector.broadcast %82 : f32 to vector<8x128xf32>
    %84 = arith.mulf %83, %81 : vector<8x128xf32>
    %85 = arith.addf %69, %84 : vector<8x128xf32>
    %cst_36 = arith.constant 0.000000e+00 : f32
    %86 = vector.broadcast %cst_36 : f32 to vector<8x128xf32>
    %87 = arith.subf %86, %85 : vector<8x128xf32>
    %88 = math.exp %87 : vector<8x128xf32>
    %cst_37 = arith.constant 1.000000e+00 : f32
    %89 = vector.broadcast %cst_37 : f32 to vector<8x128xf32>
    %90 = arith.addf %89, %88 : vector<8x128xf32>
    %91 = tpu.reciprocal %90 {approx = true} : vector<8x128xf32> -> vector<8x128xf32>
    %c0_38 = arith.constant 0 : index
    %c0_39 = arith.constant 0 : index
    %92 = vector.load %arg6[%c0_38, %c0_39] : memref<8x128xf32, #tpu.memory_space<vmem>>, vector<8x128xf32>
    tpu.vector_store %arg6[%c0_38, %c0_39], %91 {strides = array<i32>} : memref<8x128xf32, #tpu.memory_space<vmem>>, vector<8x128xf32>,
    return
  }
  func.func @transform_0(%arg0: i32) -> (i32, i32) {
    %c0_i32 = arith.constant 0 : i32
    %c0_i32_0 = arith.constant 0 : i32
    %c0_i32_1 = arith.constant 0 : i32
    return %c0_i32, %c0_i32_0 : i32, i32
  }
  func.func @transform_1(%arg0: i32) -> i32 {
    %c0_i32 = arith.constant 0 : i32
    %c0_i32_0 = arith.constant 0 : i32
    return %c0_i32 : i32
  }
  func.func @transform_2(%arg0: i32) -> i32 {
    %c0_i32 = arith.constant 0 : i32
    %c0_i32_0 = arith.constant 0 : i32
    return %c0_i32 : i32
  }
  func.func @transform_3(%arg0: i32) -> i32 {
    %c0_i32 = arith.constant 0 : i32
    %c0_i32_0 = arith.constant 0 : i32
    return %c0_i32 : i32
  }
  func.func @transform_4(%arg0: i32) -> (i32, i32, i32) {
    %c0_i32 = arith.constant 0 : i32
    %c0_i32_0 = arith.constant 0 : i32
    %c0_i32_1 = arith.constant 0 : i32
    return %c0_i32, %arg0, %c0_i32_0 : i32, i32, i32
  }
  func.func @transform_5(%arg0: i32) -> (i32, i32) {
    %c0_i32 = arith.constant 0 : i32
    %c0_i32_0 = arith.constant 0 : i32
    return %arg0, %c0_i32 : i32, i32
  }
}

</mosaic_0001>

<bundles_post_ra>
// kernel: tpu_custom_call.1
= control target key start
LH: loop header
LB: loop body
LE: loop exit
PB: predicated region body
PF: predicated region fallthrough
CT: control target
= control target key end

     0   :  { %11 = vsyncpa [#allocation6], 0  ;;  %s360_s0 = inlined_call_operand.vmem [shape: f32[2,5], index: 0, kind: input, shape index: {}]   ;;  %s361_s1 = inlined_call_operand.vmem [shape: f32[5], index: 1, kind: input, shape index: {}]   ;;  %s362_s2 = inlined_call_operand.vmem [shape: f32[5], index: 2, kind: input, shape index: {}]   ;;  %s363_s3 = inlined_call_operand.<no memory space> [shape: f32[1], index: 3, kind: input, shape index: {}]   ;;  %s364_s4 = inlined_call_operand.hbm [shape: f32[2,8,128], index: 4, kind: input, shape index: {}]   ;;  %s365_s5 = inlined_call_operand.hbm [shape: f32[8,128], index: 5, kind: output, shape index: {}]  }
   0x1   :  { %12 = vsyncpa [#allocation8], 0 }
   0x2   :  { %13 = vsyncpa [#allocation4], 0  ;;  %s31_s20 = sshll.u32 %s361_s1, 4  ;;  %s32_s20 = int_to_ptr.vmem [resolvable:$true] %s31_s20 }
   0x3   :  { %14 = vsyncpa [#allocation5], 0  ;;  %s21_s23 = sshll.u32 %s360_s0, 4  ;;  %s203_s24 = scalar_lea.vmem %s32_s20, 16  ;;  %s22_s23 = int_to_ptr.vmem [resolvable:$true] %s21_s23 }
   0x4   :  { %p204_p0 = scmp.ne.s32.totalorder %s32_s20, %s203_s24  ;;  %p208_p1 = scmp.lt.s32.totalorder %s32_s20, %s32_s20 }
   0x5   :  { %p209_p2 = scmp.lt.s32.totalorder %s203_s24, %s203_s24 }
   0x7   :  { %p210_p3 = por %p209_p2, %p208_p1 }
   0x9   :  { %p211_p4 = pnand %p210_p3, %p204_p0 }
   0xb   :  { %214 = shalt.err (!%p211_p4)
}
   0xc   :  { %s287_s25 = smov [#allocation7]   ;;  %s215_s26 = scalar_lea.vmem %s22_s23, 32 }
   0xd   :  { %34 = dma.vmem_to_smem %s32_s20, 16, %s287_s25, [#allocation8]  }
   0xe   :  { %p216_p5 = scmp.ne.s32.totalorder %s22_s23, %s215_s26  ;;  %p220_p6 = scmp.lt.s32.totalorder %s22_s23, %s22_s23 }
   0xf   :  { %p221_p7 = scmp.lt.s32.totalorder %s215_s26, %s215_s26 }
  0x11   :  { %p222_p8 = por %p221_p7, %p220_p6 }
  0x13   :  { %p223_p9 = pnand %p222_p8, %p216_p5 }
  0x15   :  { %226 = shalt.err (!%p223_p9)
}
  0x16   :  { %s288_s1 = smov [#allocation3]   ;;  %s41_s28 = sshll.u32 %s362_s2, 4  ;;  %s42_s28 = int_to_ptr.vmem [resolvable:$true] %s41_s28 }
  0x17   :  { %24 = dma.vmem_to_smem %s22_s23, 32, %s288_s1, [#allocation6]  }
  0x18   :  { %s227_s29 = scalar_lea.vmem %s42_s28, 16  ;;  %p232_p11 = scmp.lt.s32.totalorder %s42_s28, %s42_s28 }
  0x19   :  { %p228_p10 = scmp.ne.s32.totalorder %s42_s28, %s227_s29  ;;  %p233_p12 = scmp.lt.s32.totalorder %s227_s29, %s227_s29 }
  0x1b   :  { %p234_p13 = por %p233_p12, %p232_p11 }
  0x1d   :  { %p235_p0 = pnand %p234_p13, %p228_p10 }
  0x1f   :  { %238 = shalt.err (!%p235_p0)
}
  0x20   :  { %s289_s30 = smov [#allocation9]   ;;  %s290_s6 = smov [#allocation10]  }
  0x21   :  { %44 = dma.vmem_to_smem %s42_s28, 16, %s289_s30, [#allocation8]  }
  0x22   :  { %s52_s7 = sshll.u32 %s290_s6, 4  ;;  %s53_s7 = int_to_ptr.vmem [resolvable:$true] %s52_s7 }
  0x23   :  { %s247_s8 = scalar_lea.vmem %s53_s7, 256  ;;  %p252_p2 = scmp.lt.s32.totalorder %s53_s7, %s53_s7 }
  0x24   :  { %p248_p1 = scmp.ne.s32.totalorder %s53_s7, %s247_s8  ;;  %p253_p3 = scmp.lt.s32.totalorder %s247_s8, %s247_s8 }
  0x26   :  { %p254_p4 = por %p253_p3, %p252_p2 }
  0x28   :  { %p255_p5 = pnand %p254_p4, %p248_p1 }
  0x2a   :  { %258 = shalt.err (!%p255_p5)
}
  0x2b   :  { %s291_s2 = smov 128   ;;  %s292_s9 = smov 8  }
  0x2c   :  { %58 = dma.hbm_to_vmem [thread:$0]  %s364_s4, 256, %s53_s7, [#allocation4], %s291_s2, %s291_s2, %s292_s9  }
  0x2d   :  { %279 = dma.done.wait [#allocation6], 32  }
  0x2e   :  { %280 = vsyncadd [#allocation6], 4294967264 }
  0x2f   :  { %281 = dma.done.wait [#allocation8], 32  }
  0x30   :  { %282 = vsyncadd [#allocation8], 4294967264 }
  0x31   :  { %283 = dma.done.wait [#allocation4], 256  }
  0x32   :  { %284 = vsyncadd [#allocation4], 4294967040 }
  0x33   :  { %71 = sfence }
  0x34   :  { %s77_s12 = sld [smem:[#allocation3]]  ;;  %v72_v0 = vld [vmem:[#allocation10] sm:$0xff]  ;;  %v74_v1 = vld [vmem:[#allocation10 + $0x8] sm:$0xff]  ;;  %v76_v18 = vstv %s363_s3  ;;  %s293_s30 = smov [#allocation11]  }
  0x35   :  { %s175_s13 = sld [smem:[#allocation3 + $0x80]]  ;;  %s164_s6 = sshll.u32 %s293_s30, 4  ;;  %s165_s6 = int_to_ptr.vmem [resolvable:$true] %s164_s6 }
  0x36   :  { %s84_s14 = sld [smem:[#allocation7]]  ;;  %s259_s7 = scalar_lea.vmem %s165_s6, 128 }
  0x37   :  { %s336_s15 = sld [smem:[#allocation9]]  ;;  %p260_p6 = scmp.ne.s32.totalorder %s165_s6, %s259_s7 }
  0x38   :  { %s176_s16 = sld [smem:[#allocation3 + $0x1]]  ;;  %p264_p7 = scmp.lt.s32.totalorder %s165_s6, %s165_s6 }
  0x39   :  { %s177_s17 = sld [smem:[#allocation3 + $0x81]]  ;;  %p265_p8 = scmp.lt.s32.totalorder %s259_s7, %s259_s7 }
  0x3a   :  { %v78_v2 = vstv %s77_s12  ;;  %s178_s18 = sld [smem:[#allocation7 + $0x1]] }
  0x3b   :  { %v79_v3 = vmul.f32 %v78_v2, %v72_v0  ;;  %v81_v4 = vstv %s175_s13  ;;  %s338_s4 = sld [smem:[#allocation9 + $0x1]]  ;;  %p266_p9 = por %p265_p8, %p264_p7 }
  0x3c   :  { %v82_v5 = vmul.f32 %v81_v4, %v74_v1  ;;  %s180_s19 = sld [smem:[#allocation3 + $0x2]]  ;;  %v85_v6 = vstv %s84_s14 }
  0x3d   :  { %s181_s20 = sld [smem:[#allocation3 + $0x82]]  ;;  %v89_v13 = vstv %s336_s15  ;;  %p267_p10 = pnand %p266_p9, %p260_p6 }
  0x3e   :  { %v83_v7 = vadd.f32 %v82_v5, %v79_v3  ;;  %v93_v8 = vstv %s176_s16  ;;  %s340_s21 = sld [smem:[#allocation7 + $0x2]] }
  0x3f   :  { %v94_v9 = vmul.f32 %v93_v8, %v72_v0  ;;  %v96_v10 = vstv %s177_s17  ;;  %s342_s22 = sld [smem:[#allocation9 + $0x2]] }
  0x40   :  { %v86_v11 = vadd.f32 %v85_v6, %v83_v7  ;;  %v97_v12 = vmul.f32 %v96_v10, %v74_v1  ;;  %s184_s23 = sld [smem:[#allocation3 + $0x3]]  ;;  %v100_v14 = vstv %s178_s18 }
  0x41   :  { %s185_s24 = sld [smem:[#allocation3 + $0x83]]  ;;  %v104_v24 = vstv %s338_s4 }
  0x42   :  { %v87_v15 = vmax.f32 %v86_v11, 0.0  ;;  %v98_v16 = vadd.f32 %v97_v12, %v94_v9  ;;  %v108_v17 = vstv %s180_s19  ;;  %s345_s25 = sld [smem:[#allocation7 + $0x3]] }
  0x43   :  { %v109_v19 = vmul.f32 %v108_v17, %v72_v0  ;;  %v111_v20 = vstv %s181_s20  ;;  %s350_s0 = sld [smem:[#allocation9 + $0x3]] }
  0x44   :  { %v90_v21 = vmul.f32 %v89_v13, %v87_v15  ;;  %v101_v22 = vadd.f32 %v100_v14, %v98_v16  ;;  %v112_v23 = vmul.f32 %v111_v20, %v74_v1  ;;  %s188_s27 = sld [smem:[#allocation3 + $0x4]]  ;;  %v115_v25 = vstv %s340_s21 }
  0x45   :  { %s189_s28 = sld [smem:[#allocation3 + $0x84]]  ;;  %v119_v35 = vstv %s342_s22 }
  0x46   :  { %v91_v26 = vadd.f32 %v90_v21, %v76_v18  ;;  %v102_v27 = vmax.f32 %v101_v22, 0.0  ;;  %v113_v28 = vadd.f32 %v112_v23, %v109_v19  ;;  %v123_v29 = vstv %s184_s23  ;;  %s190_s29 = sld [smem:[#allocation7 + $0x4]] }
  0x47   :  { %v124_v30 = vmul.f32 %v123_v29, %v72_v0  ;;  %v126_v31 = vstv %s185_s24  ;;  %s191_s3 = sld [smem:[#allocation9 + $0x4]] }
  0x48   :  { %v105_v32 = vmul.f32 %v104_v24, %v102_v27  ;;  %v116_v33 = vadd.f32 %v115_v25, %v113_v28  ;;  %v127_v34 = vmul.f32 %v126_v31, %v74_v1  ;;  %v130_v36 = vstv %s345_s25 }
  0x49   :  { %v134_v46 = vstv %s350_s0 }
  0x4a   :  { %v106_v37 = vadd.f32 %v105_v32, %v91_v26  ;;  %v117_v38 = vmax.f32 %v116_v33, 0.0  ;;  %v128_v39 = vadd.f32 %v127_v34, %v124_v30  ;;  %v138_v40 = vstv %s188_s27 }
  0x4b   :  { %v139_v41 = vmul.f32 %v138_v40, %v72_v0  ;;  %v141_v42 = vstv %s189_s28 }
  0x4c   :  { %v120_v43 = vmul.f32 %v119_v35, %v117_v38  ;;  %v131_v44 = vadd.f32 %v130_v36, %v128_v39  ;;  %v142_v45 = vmul.f32 %v141_v42, %v74_v1  ;;  %v145_v47 = vstv %s190_s29 }
  0x4d   :  { %v149_v53 = vstv %s191_s3 }
  0x4e   :  { %v121_v48 = vadd.f32 %v120_v43, %v106_v37  ;;  %v132_v49 = vmax.f32 %v131_v44, 0.0  ;;  %v143_v50 = vadd.f32 %v142_v45, %v139_v41 }
  0x50   :  { %v135_v51 = vmul.f32 %v134_v46, %v132_v49  ;;  %v146_v52 = vadd.f32 %v145_v47, %v143_v50 }
  0x52   :  { %v136_v54 = vadd.f32 %v135_v51, %v121_v48  ;;  %v147_v55 = vmax.f32 %v146_v52, 0.0 }
  0x54   :  { %v150_v56 = vmul.f32 %v149_v53, %v147_v55 }
  0x56   :  { %v151_v57 = vadd.f32 %v150_v56, %v136_v54 }
  0x58   :  { %v152_v58 = vsub.f32 0.0, %v151_v57 }
  0x5a   :  { %v153_v59 = vmul.f32 1.442695, %v152_v58 }
  0x5c   :  { %199 = vpow2.f32 %v153_v59 }
  0x69   :  { %v200_v60 = vpop.eup %199 }
  0x6a   :  { %v155_v61 = vadd.f32 1.0, %v200_v60 }
  0x6c   :  { %201 = vrcp.f32 %v155_v61 }
  0x79   :  { %v202_v62 = vpop.eup %201 }
  0x7a   :  { %157 = vst [vmem:[#allocation11] sm:$0xff] %v202_v62 }
  0x7b   :  { %270 = shalt.err (!%p267_p10)
}
  0x7c   :  { %167 = dma.vmem_to_hbm [thread:$0]  %s165_s6, 128, %s365_s5, [#allocation5]  }
  0x7d   :  { %285 = dma.done.wait [#allocation5], 128  }
  0x7e   :  { %286 = vsyncadd [#allocation5], 4294967168 }
  0x7f   :  { %171 = vsyncpa [#allocation4], 1 }
  0x80   :  { %172 = vsyncpa [#allocation5], 1 }
  0x81   :  { %173 = vsyncpa [#allocation6], 1 }
  0x82   :  { %174 = vsyncpa [#allocation8], 1 }

</bundles_post_ra>
